<compile_context>
chip_gen: v5e
topology: v5e:2x2
jax: 0.10.0
libtpu: 0.0.40
codegen_flags: <defaults>
</compile_context>

<pallas_src>
from dataclasses import dataclass

import jax
import jax.numpy as jnp
from jax.experimental import pallas as pl
from jax.experimental.pallas import tpu as pltpu


@dataclass
class Output:
    thing: jax.Array
    status: str


# ---------------------------------------------------------------------------
# Kernel
# ---------------------------------------------------------------------------
def _eg_kernel(x_ref, o_ref):
    # Pure elementwise: multiply on the VPU, sigmoid on the EUP, in the
    # native floating dtype.  Compute is fully hidden under the HBM<->VMEM DMA.
    x = x_ref[...]
    o_ref[...] = jax.nn.sigmoid(x * 3)


# ---------------------------------------------------------------------------
# Budgets & tiling (HBM-bandwidth-bound op: only tile bytes / layout matter)
# ---------------------------------------------------------------------------
_SPLIT_THRESHOLD_BYTES = 1 << 20  # split rows for megacore above this size


def _vmem_budgets() -> tuple[int, int]:
    """Return (per-tile byte budget, vmem_limit_bytes), per chip generation."""
    cap = 64 << 20  # conservative default: v7x per-TC physical VMEM
    try:
        cap = int(getattr(pltpu.get_tpu_info(), "vmem_capacity_bytes", cap)) or cap
    except Exception:
        pass
    footprint = min(40 << 20, cap // 2)          # double-buffered in+out tiles
    tile_budget = min(8 << 20, footprint // 4)   # ~4-8 MiB/tile: roofline plateau
    vmem_limit = min(cap * 3 // 4, footprint + (24 << 20))
    return tile_budget, vmem_limit


def _row_floor(dtype) -> int:
    """Minimum sublane tile for the dtype (native packing)."""
    itemsize = jnp.dtype(dtype).itemsize
    if itemsize >= 4:
        return 8
    if itemsize == 2:
        return 16
    return 32


def _pick_lane_cols(total: int) -> int:
    """Lane-dense column count for a flattened elementwise view."""
    # Prefer a divisor of `total` (no padding) that leaves >= 8 rows.
    for c in (4096, 2048, 1024, 512, 256, 128):
        if total % c == 0 and total // c >= 8:
            return c
    for c in (4096, 2048, 1024, 512, 256, 128):
        if total % c == 0:
            return c
    # No 128-multiple divides `total`: caller pads by < cols elements.
    return 512 if total >= 8 * 512 else 128


def _pick_tiles(rows: int, cols: int, dtype, tile_budget: int) -> tuple[int, int]:
    itemsize = jnp.dtype(dtype).itemsize
    floor = _row_floor(dtype)
    row_unit = floor if rows > floor else rows  # minimal legal row block

    # Column tile.  The wrapper guarantees cols % 128 == 0, so partial-width
    # blocks are always legal; only block columns when even a minimal-height
    # full-width slab would bust the per-tile byte budget.
    if row_unit * cols * itemsize <= tile_budget:
        tile_cols = cols
    else:
        tile_cols = (tile_budget // max(1, row_unit * itemsize)) // 128 * 128
        tile_cols = max(128, min(tile_cols, cols))

    # Row tile: biggest floor-multiple slab within the byte budget.
    if rows <= floor:
        tile_rows = rows
    else:
        by_budget = max(floor, tile_budget // max(1, tile_cols * itemsize))
        tile_rows = min(rows, by_budget)
        tile_rows = max(floor, (tile_rows // floor) * floor)
        if tile_rows >= rows:
            tile_rows = rows  # single full-extent row block

    # Megacore: if the whole array fits in one block but is big enough to be
    # worth splitting, cut the row axis so both TensorCores get a block.
    if (
        tile_rows >= rows
        and tile_cols >= cols
        and rows >= 2 * floor
        and rows * cols * itemsize >= _SPLIT_THRESHOLD_BYTES
    ):
        half = -(-rows // 2)                     # ceil(rows / 2)
        tile_rows = -(-half // floor) * floor    # round up to sublane floor

    return tile_rows, tile_cols


# ---------------------------------------------------------------------------
# Wrapper
# ---------------------------------------------------------------------------
def eg_module(x: jax.Array) -> Output:
    """Pallas implementation of EgModule.forward: sigmoid(x * 3)."""
    # Integer inputs promote to float (sigmoid output is fractional).
    out_dtype = x.dtype if jnp.issubdtype(x.dtype, jnp.floating) else jnp.float32

    if x.ndim == 0 or x.size == 0:
        # Degenerate cases: a kernel launch is pure overhead.
        return Output(thing=jax.nn.sigmoid(x.astype(out_dtype) * 3), status="ok")

    x = x.astype(out_dtype)
    orig_shape = x.shape
    total = x.size
    last = orig_shape[-1]
    lead = total // last

    # Present a lane-dense 2-D slab to the kernel (unmasked stores, no
    # sublane/lane padding waste).  Elementwise semantics make reshapes free.
    pad = 0
    flattened = False
    if x.ndim >= 2 and last % 128 == 0 and lead >= 2:
        x2 = x.reshape(lead, last)
    else:
        flattened = True
        cols = _pick_lane_cols(total)
        pad = (-total) % cols
        flat = x.reshape(-1)
        if pad:
            flat = jnp.pad(flat, (0, pad))
        x2 = flat.reshape(-1, cols)

    rows, cols = x2.shape
    tile_budget, vmem_limit = _vmem_budgets()
    tile_rows, tile_cols = _pick_tiles(rows, cols, x2.dtype, tile_budget)
    grid = (pl.cdiv(rows, tile_rows), pl.cdiv(cols, tile_cols))

    thing2 = pl.pallas_call(
        _eg_kernel,
        out_shape=jax.ShapeDtypeStruct((rows, cols), out_dtype),
        grid=grid,
        in_specs=[pl.BlockSpec((tile_rows, tile_cols), lambda i, j: (i, j))],
        out_specs=pl.BlockSpec((tile_rows, tile_cols), lambda i, j: (i, j)),
        compiler_params=pltpu.CompilerParams(
            dimension_semantics=("parallel", "parallel"),
            vmem_limit_bytes=vmem_limit,
        ),
    )(x2)

    if flattened:
        thing = thing2.reshape(-1)[:total].reshape(orig_shape)
    else:
        thing = thing2.reshape(orig_shape)
    return Output(thing=thing, status="ok")


# ---------------------------------------------------------------------------
# Smoke test
# ---------------------------------------------------------------------------
if __name__ == "__main__":
    key = jax.random.PRNGKey(0)
    k1, k2, k3 = jax.random.split(key, 3)

    # Shape implied by the module spec: (2, 4, 16, 16) f32 -> flatten path.
    x = jax.random.normal(k1, (2, 4, 16, 16), dtype=jnp.float32)
    out = eg_module(x)
    jax.block_until_ready(out.thing)
    ref = jax.nn.sigmoid(x * 3.0)
    assert out.status == "ok"
    assert out.thing.shape == x.shape
    assert out.thing.dtype == x.dtype
    assert jnp.allclose(out.thing, ref, atol=1e-6), "f32 mismatch vs reference"

    # bf16 with a lane-dense last dim -> natural (rows, cols) view, native math.
    xbf = jax.random.normal(k2, (2, 16, 256), dtype=jnp.bfloat16)
    outbf = eg_module(xbf)
    jax.block_until_ready(outbf.thing)
    refbf = jax.nn.sigmoid(xbf.astype(jnp.float32) * 3.0)
    assert outbf.status == "ok"
    assert outbf.thing.shape == xbf.shape
    assert outbf.thing.dtype == xbf.dtype
    assert jnp.allclose(
        outbf.thing.astype(jnp.float32), refbf, atol=3e-2
    ), "bf16 mismatch vs reference"

    # 1-D, non-128-aligned input -> flatten + pad path.
    x1d = jax.random.normal(k3, (1000,), dtype=jnp.float32)
    out1d = eg_module(x1d)
    jax.block_until_ready(out1d.thing)
    ref1d = jax.nn.sigmoid(x1d * 3.0)
    assert out1d.status == "ok"
    assert out1d.thing.shape == x1d.shape
    assert jnp.allclose(out1d.thing, ref1d, atol=1e-6), "1-D mismatch vs reference"

    print("KERNEL_OK")
</pallas_src>

<mosaic_0001>
module attributes {stable_mosaic.version = 11 : i64} {
  func.func @_eg_kernel(%arg0: i32, %arg1: i32, %arg2: memref<8x256xf32, #tpu.memory_space<vmem>>, %arg3: memref<8x256xf32, #tpu.memory_space<vmem>>) attributes {dimension_semantics = [#tpu.dimension_semantics<parallel>, #tpu.dimension_semantics<parallel>], iteration_bounds = array<i64: 1, 1>, scalar_prefetch = 0 : i64, scratch_operands = 0 : i64, tpu.core_type = #tpu.core_type<tc>, window_params = [{transform_indices = @transform_0, window_bounds = array<i64: 8, 256>}, {transform_indices = @transform_1, window_bounds = array<i64: 8, 256>}]} {
    %c0 = arith.constant 0 : index
    %c0_0 = arith.constant 0 : index
    %0 = vector.load %arg2[%c0, %c0_0] : memref<8x256xf32, #tpu.memory_space<vmem>>, vector<8x256xf32>
    %cst = arith.constant 3.000000e+00 : f32
    %1 = vector.broadcast %cst : f32 to vector<8x256xf32>
    %2 = arith.mulf %0, %1 : vector<8x256xf32>
    %3 = arith.negf %2 : vector<8x256xf32>
    %4 = math.exp %3 : vector<8x256xf32>
    %cst_1 = arith.constant 1.000000e+00 : f32
    %5 = vector.broadcast %cst_1 : f32 to vector<8x256xf32>
    %6 = arith.addf %5, %4 : vector<8x256xf32>
    %7 = arith.divf %5, %6 : vector<8x256xf32>
    %c0_2 = arith.constant 0 : index
    %c0_3 = arith.constant 0 : index
    %8 = vector.load %arg3[%c0_2, %c0_3] : memref<8x256xf32, #tpu.memory_space<vmem>>, vector<8x256xf32>
    tpu.vector_store %arg3[%c0_2, %c0_3], %7 {strides = array<i32>} : memref<8x256xf32, #tpu.memory_space<vmem>>, vector<8x256xf32>,
    return
  }
  func.func @transform_0(%arg0: i32, %arg1: i32) -> (i32, i32) {
    %c0_i32 = arith.constant 0 : i32
    return %arg0, %arg1 : i32, i32
  }
  func.func @transform_1(%arg0: i32, %arg1: i32) -> (i32, i32) {
    %c0_i32 = arith.constant 0 : i32
    return %arg0, %arg1 : i32, i32
  }
}

</mosaic_0001>

<bundles_post_ra>
// kernel: tpu_custom_call.1
= control target key start
LH: loop header
LB: loop body
LE: loop exit
PB: predicated region body
PF: predicated region fallthrough
CT: control target
= control target key end

     0   :  { %6 = vsyncpa [#allocation3], 0  ;;  %s166_s0 = inlined_call_operand.hbm [shape: f32[8,256], index: 0, kind: input, shape index: {}]   ;;  %s167_s1 = inlined_call_operand.hbm [shape: f32[8,256], index: 1, kind: output, shape index: {}]  }
   0x1   :  { %7 = vsyncpa [#allocation4], 0  ;;  %s13_s8 = sshll.u32 %s166_s0, 4  ;;  %s148_s9 = smov [#allocation2]   ;;  %s14_s8 = int_to_ptr.hbm [resolvable:$true] %s13_s8 }
   0x2   :  { %s15_s10 = sshll.u32 %s148_s9, 4  ;;  %s16_s10 = int_to_ptr.vmem [resolvable:$true] %s15_s10 }
   0x3   :  { %18 = dma.hbm_to_vmem [thread:$0]  %s14_s8, 256, %s16_s10, [#allocation3]  }
   0x4   :  { %144 = dma.done.wait [#allocation3], 256  }
   0x5   :  { %145 = vsyncadd [#allocation3], 4294967040  ;;  %v23_v0 = vld [vmem:[#allocation2] sm:$0xff]  ;;  %v24_v1 = vld [vmem:[#allocation2 + $0x8] sm:$0xff]  ;;  %s149_s0 = smov [#allocation5]   ;;  %s74_s14 = sshll.u32 %s167_s1, 4  ;;  %s75_s14 = int_to_ptr.hbm [resolvable:$true] %s74_s14 }
   0x6   :  { %v84_v2 = vmul.f32 -3.0, %v23_v0  ;;  %v85_v3 = vmul.f32 -3.0, %v24_v1  ;;  %s72_s11 = sshll.u32 %s149_s0, 4  ;;  %s73_s11 = int_to_ptr.vmem [resolvable:$true] %s72_s11 }
   0x8   :  { %v29_v4 = vmul.f32 1.442695, %v84_v2  ;;  %v31_v5 = vmul.f32 1.442695, %v85_v3 }
   0xa   :  { %88 = vpow2.f32 %v29_v4 }
   0xb   :  { %90 = vpow2.f32 %v31_v5 }
  0x10   :  { %v89_v6 = vpop.eup %88 }
  0x11   :  { %v91_v7 = vpop.eup %90  ;;  %v33_v8 = vadd.f32 1.0, %v89_v6 }
  0x12   :  { %v34_v9 = vadd.f32 1.0, %v91_v7 }
  0x13   :  { %92 = vrcp.f32 %v33_v8  ;;  %vm40_vm0 = vweird.f32 %v33_v8  ;;  %v46_v13 = vand.u32 2147483648, %v33_v8  ;;  %v44_v16 = vand.u32 2147483647, %v33_v8 }
  0x14   :  { %94 = vrcp.f32 %v34_v9  ;;  %v61_v17 = vand.u32 2147483648, %v34_v9  ;;  %vm55_vm2 = vweird.f32 %v34_v9  ;;  %v59_v19 = vand.u32 2147483647, %v34_v9 }
  0x15   :  { %v47_v21 = vor.u32 1.1754944e-38, %v46_v13  ;;  %vm45_vm5 = vcmp.eq.f32.partialorder %v44_v16, 8.507059e+37 }
  0x16   :  { %v62_v24 = vor.u32 1.1754944e-38, %v61_v17  ;;  %vm60_vm7 = vcmp.eq.f32.partialorder %v59_v19, 8.507059e+37 }
  0x19   :  { %v93_v10 = vpop.eup %92 }
  0x1a   :  { %v95_v11 = vpop.eup %94  ;;  %v36_v12 = vmul.f32 %v93_v10, %v33_v8  ;;  %vm41_vm1 = vweird.f32 %v93_v10 }
  0x1b   :  { %v51_v14 = vmul.f32 %v95_v11, %v34_v9  ;;  %vm56_vm3 = vweird.f32 %v95_v11  ;;  %vm42_vm4 = vmor %vm40_vm0, %vm41_vm1 }
  0x1c   :  { %v37_v15 = vsub.f32 1.0, %v36_v12  ;;  %vm57_vm6 = vmor %vm55_vm2, %vm56_vm3 }
  0x1d   :  { %v52_v18 = vsub.f32 1.0, %v51_v14 }
  0x1e   :  { %v38_v20 = vmul.f32 %v93_v10, %v37_v15 }
  0x1f   :  { %v53_v22 = vmul.f32 %v95_v11, %v52_v18 }
  0x20   :  { %v39_v23 = vadd.f32 %v93_v10, %v38_v20 }
  0x21   :  { %v54_v25 = vadd.f32 %v95_v11, %v53_v22 }
  0x22   :  { %v43_v26 = vsel %vm42_vm4, %v93_v10, %v39_v23 }
  0x23   :  { %v48_v27 = vsel %vm45_vm5, %v47_v21, %v43_v26  ;;  %v58_v28 = vsel %vm57_vm6, %v95_v11, %v54_v25 }
  0x24   :  { %65 = vst [vmem:[#allocation5] sm:$0xff] %v48_v27  ;;  %v63_v29 = vsel %vm60_vm7, %v62_v24, %v58_v28 }
  0x25   :  { %66 = vst [vmem:[#allocation5 + $0x8] sm:$0xff] %v63_v29 }
  0x26   :  { %77 = dma.vmem_to_hbm [thread:$0]  %s73_s11, 256, %s75_s14, [#allocation4]  }
  0x27   :  { %146 = dma.done.wait [#allocation4], 256  }
  0x28   :  { %147 = vsyncadd [#allocation4], 4294967040 }
  0x29   :  { %82 = vsyncpa [#allocation3], 1 }
  0x2a   :  { %83 = vsyncpa [#allocation4], 1 }

</bundles_post_ra>
